<compile_context>
chip_gen: v7x
topology: tpu7x:2x2x1
jax: 0.10.0
libtpu: 0.0.40
codegen_flags: <defaults>
</compile_context>

<pallas_src>
import jax
import jax.numpy as jnp
from jax.experimental import pallas as pl
from jax.experimental.pallas import tpu as pltpu


def _round_up(x, m):
    return ((x + m - 1) // m) * m


def valuenet_kernel(x_ref, w1_ref, b1_ref, w2_ref, b2_ref,
                    w3_ref, b3_ref, w4_ref, b4_ref, o_ref):
    # x: (TB, D_pad) bf16; w1/w2/w3 bf16; biases + head row f32.
    x = x_ref[...]
    h1 = jnp.tanh(jnp.dot(x, w1_ref[...],
                          preferred_element_type=jnp.float32) + b1_ref[...])
    h2 = jnp.tanh(jnp.dot(h1.astype(jnp.bfloat16), w2_ref[...],
                          preferred_element_type=jnp.float32) + b2_ref[...])
    h3 = jnp.tanh(jnp.dot(h2.astype(jnp.bfloat16), w3_ref[...],
                          preferred_element_type=jnp.float32) + b3_ref[...])
    # Head (out_dim == 1): VPU multiply + cross-lane reduce (XLU) instead of
    # an MXU matmul with N=1.  w4_ref is a (1, 128) f32 row (zeros past 64).
    out = jnp.sum(h3 * w4_ref[...], axis=-1, keepdims=True) + b4_ref[...]
    o_ref[...] = jnp.clip(out, -1000.0, 1000.0)


def value_net_forward(state, params, tb=512):
    """state: (B, stateDim) f32.  params: list of (w, b) with w as (in, out)."""
    (w1, b1), (w2, b2), (w3, b3), (w4, b4) = params
    B, D = state.shape
    H1 = w1.shape[1]          # 256
    H2 = w2.shape[1]          # 256
    H3 = w3.shape[1]          # 64
    D_pad = _round_up(max(D, 128), 128)
    H3_pad = _round_up(max(H3, 128), 128)

    # Batch tile: multiple of 8 (sublane granularity), at most `tb`.
    TB = min(_round_up(tb, 8), _round_up(B, 8))
    B_pad = _round_up(B, TB)
    grid = (pl.cdiv(B_pad, TB),)

    # --- wrapper-side layout plumbing (pure padding / dtype casts) ---
    x_p = jnp.pad(state, ((0, B_pad - B), (0, D_pad - D))).astype(jnp.bfloat16)
    w1_p = jnp.pad(w1, ((0, D_pad - D), (0, 0))).astype(jnp.bfloat16)
    w2_p = w2.astype(jnp.bfloat16)
    w3_p = jnp.pad(w3, ((0, 0), (0, H3_pad - H3))).astype(jnp.bfloat16)
    b3_p = jnp.pad(b3, ((0, 0), (0, H3_pad - H3))).astype(jnp.float32)
    # Head weight as an f32 row vector, zero-padded to 128 lanes: (1, 128).
    w4_p = jnp.pad(w4, ((0, H3_pad - H3), (0, 0))).T.astype(jnp.float32)
    b1_p = b1.astype(jnp.float32)
    b2_p = b2.astype(jnp.float32)
    b4_p = b4.astype(jnp.float32)                                   # (1, 1)

    def resident(shape):
        # Whole array as one block; constant index map -> DMA'd once, stays
        # resident in VMEM across all batch tiles.
        return pl.BlockSpec(shape, lambda i, _s=shape: tuple(0 for _ in _s))

    flops = 2 * B_pad * (D_pad * H1 + H1 * H2 + H2 * H3_pad + H3_pad)
    transcendentals = B_pad * (H1 + H2 + H3_pad)
    bytes_accessed = (
        x_p.size * 2
        + (w1_p.size + w2_p.size + w3_p.size) * 2
        + (b1_p.size + b2_p.size + b3_p.size + w4_p.size + b4_p.size) * 4
        + B_pad * 4)

    out_pad = pl.pallas_call(
        valuenet_kernel,
        out_shape=jax.ShapeDtypeStruct((B_pad, 1), jnp.float32),
        grid=grid,
        in_specs=[
            pl.BlockSpec((TB, D_pad), lambda i: (i, 0)),    # state tile
            resident((D_pad, H1)), resident((1, H1)),       # fc1
            resident((H1, H2)),    resident((1, H2)),       # fc2
            resident((H2, H3_pad)), resident((1, H3_pad)),  # fc3 (64 -> 128 pad)
            resident((1, H3_pad)), resident((1, 1)),        # fc4 head row + bias
        ],
        out_specs=pl.BlockSpec((TB, 1), lambda i: (i, 0)),
        compiler_params=pltpu.CompilerParams(
            dimension_semantics=("parallel",)),
        cost_estimate=pl.CostEstimate(flops=flops,
                                      transcendentals=transcendentals,
                                      bytes_accessed=bytes_accessed),
    )(x_p, w1_p, b1_p, w2_p, b2_p, w3_p, b3_p, w4_p, b4_p)

    return out_pad[:B]


def init_params(key, state_dim):
    """Matches the PyTorch module: weights xavier_normal_, biases default
    Linear init U(-1/sqrt(fan_in), 1/sqrt(fan_in)). Stored as (in, out)."""
    dims = [(state_dim, 256), (256, 256), (256, 64), (64, 1)]
    params = []
    for (fan_in, fan_out) in dims:
        key, kw, kb = jax.random.split(key, 3)
        std = (2.0 / (fan_in + fan_out)) ** 0.5
        w = std * jax.random.normal(kw, (fan_in, fan_out), dtype=jnp.float32)
        bound = 1.0 / (fan_in ** 0.5)
        b = jax.random.uniform(kb, (1, fan_out), minval=-bound, maxval=bound,
                               dtype=jnp.float32)
        params.append((w, b))
    return params


def reference_forward(state, params):
    x = state
    for i, (w, b) in enumerate(params):
        x = x @ w + b
        if i < 3:
            x = jnp.tanh(x)
    return jnp.clip(x, -1000.0, 1000.0)


if __name__ == "__main__":
    key = jax.random.PRNGKey(0)
    k_in, k_par = jax.random.split(key)

    B, STATE_DIM = 8, 32
    state = jax.random.normal(k_in, (B, STATE_DIM), dtype=jnp.float32)
    params = init_params(k_par, STATE_DIM)

    out = jax.block_until_ready(value_net_forward(state, params))

    ref = reference_forward(state, params)            # f32 reference
    assert out.shape == (B, 1)
    # bf16 weights/activations in the kernel -> compare at bf16-level tolerance.
    assert jnp.allclose(out, ref, atol=5e-2, rtol=5e-2), (out, ref)

    print("KERNEL_OK")
</pallas_src>

<mosaic_0001>
module attributes {stable_mosaic.version = 11 : i64} {
  func.func @valuenet_kernel(%arg0: i32, %arg1: memref<8x128xbf16, #tpu.memory_space<vmem>>, %arg2: memref<128x256xbf16, #tpu.memory_space<vmem>>, %arg3: memref<1x256xf32, #tpu.memory_space<vmem>>, %arg4: memref<256x256xbf16, #tpu.memory_space<vmem>>, %arg5: memref<1x256xf32, #tpu.memory_space<vmem>>, %arg6: memref<256x128xbf16, #tpu.memory_space<vmem>>, %arg7: memref<1x128xf32, #tpu.memory_space<vmem>>, %arg8: memref<1x128xf32, #tpu.memory_space<vmem>>, %arg9: memref<1x1xf32, #tpu.memory_space<vmem>>, %arg10: memref<8x1xf32, #tpu.memory_space<vmem>>) attributes {dimension_semantics = [#tpu.dimension_semantics<parallel>], iteration_bounds = array<i64: 1>, scalar_prefetch = 0 : i64, scratch_operands = 0 : i64, tpu.core_type = #tpu.core_type<tc>, window_params = [{transform_indices = @transform_0, window_bounds = array<i64: 8, 128>}, {pipeline_mode = #tpu.pipeline_mode<synchronous>, transform_indices = @transform_1, window_bounds = array<i64: 128, 256>}, {pipeline_mode = #tpu.pipeline_mode<synchronous>, transform_indices = @transform_2, window_bounds = array<i64: 1, 256>}, {pipeline_mode = #tpu.pipeline_mode<synchronous>, transform_indices = @transform_3, window_bounds = array<i64: 256, 256>}, {pipeline_mode = #tpu.pipeline_mode<synchronous>, transform_indices = @transform_4, window_bounds = array<i64: 1, 256>}, {pipeline_mode = #tpu.pipeline_mode<synchronous>, transform_indices = @transform_5, window_bounds = array<i64: 256, 128>}, {pipeline_mode = #tpu.pipeline_mode<synchronous>, transform_indices = @transform_6, window_bounds = array<i64: 1, 128>}, {pipeline_mode = #tpu.pipeline_mode<synchronous>, transform_indices = @transform_7, window_bounds = array<i64: 1, 128>}, {pipeline_mode = #tpu.pipeline_mode<synchronous>, transform_indices = @transform_8, window_bounds = array<i64: 1, 1>}, {transform_indices = @transform_9, window_bounds = array<i64: 8, 1>}]} {
    %c0 = arith.constant 0 : index
    %c0_0 = arith.constant 0 : index
    %0 = vector.load %arg1[%c0, %c0_0] : memref<8x128xbf16, #tpu.memory_space<vmem>>, vector<8x128xbf16>
    %c0_1 = arith.constant 0 : index
    %c0_2 = arith.constant 0 : index
    %1 = vector.load %arg2[%c0_1, %c0_2] : memref<128x256xbf16, #tpu.memory_space<vmem>>, vector<128x256xbf16>
    %cst = arith.constant dense<0.000000e+00> : vector<8x256xf32>
    %2 = tpu.matmul %0, %1, %cst {dimension_numbers = #tpu.dot_dimension_numbers<[1], [0], [0], [1], [0, 0, 1, 1], [], []>} : vector<8x128xbf16>, vector<128x256xbf16>, vector<8x256xf32> -> vector<8x256xf32>
    %c0_3 = arith.constant 0 : index
    %c0_4 = arith.constant 0 : index
    %3 = vector.load %arg3[%c0_3, %c0_4] : memref<1x256xf32, #tpu.memory_space<vmem>>, vector<1x256xf32>
    %4 = vector.broadcast %3 : vector<1x256xf32> to vector<8x256xf32>
    %5 = arith.addf %2, %4 : vector<8x256xf32>
    %6 = math.tanh %5 : vector<8x256xf32>
    %7 = arith.truncf %6 : vector<8x256xf32> to vector<8x256xbf16>
    %c0_5 = arith.constant 0 : index
    %c0_6 = arith.constant 0 : index
    %8 = vector.load %arg4[%c0_5, %c0_6] : memref<256x256xbf16, #tpu.memory_space<vmem>>, vector<256x256xbf16>
    %cst_7 = arith.constant dense<0.000000e+00> : vector<8x256xf32>
    %9 = tpu.matmul %7, %8, %cst_7 {dimension_numbers = #tpu.dot_dimension_numbers<[1], [0], [0], [1], [0, 0, 1, 1], [], []>} : vector<8x256xbf16>, vector<256x256xbf16>, vector<8x256xf32> -> vector<8x256xf32>
    %c0_8 = arith.constant 0 : index
    %c0_9 = arith.constant 0 : index
    %10 = vector.load %arg5[%c0_8, %c0_9] : memref<1x256xf32, #tpu.memory_space<vmem>>, vector<1x256xf32>
    %11 = vector.broadcast %10 : vector<1x256xf32> to vector<8x256xf32>
    %12 = arith.addf %9, %11 : vector<8x256xf32>
    %13 = math.tanh %12 : vector<8x256xf32>
    %14 = arith.truncf %13 : vector<8x256xf32> to vector<8x256xbf16>
    %c0_10 = arith.constant 0 : index
    %c0_11 = arith.constant 0 : index
    %15 = vector.load %arg6[%c0_10, %c0_11] : memref<256x128xbf16, #tpu.memory_space<vmem>>, vector<256x128xbf16>
    %cst_12 = arith.constant dense<0.000000e+00> : vector<8x128xf32>
    %16 = tpu.matmul %14, %15, %cst_12 {dimension_numbers = #tpu.dot_dimension_numbers<[1], [0], [0], [1], [0, 0, 1, 1], [], []>} : vector<8x256xbf16>, vector<256x128xbf16>, vector<8x128xf32> -> vector<8x128xf32>
    %c0_13 = arith.constant 0 : index
    %c0_14 = arith.constant 0 : index
    %17 = vector.load %arg7[%c0_13, %c0_14] : memref<1x128xf32, #tpu.memory_space<vmem>>, vector<1x128xf32>
    %18 = vector.broadcast %17 : vector<1x128xf32> to vector<8x128xf32>
    %19 = arith.addf %16, %18 : vector<8x128xf32>
    %20 = math.tanh %19 : vector<8x128xf32>
    %c0_15 = arith.constant 0 : index
    %c0_16 = arith.constant 0 : index
    %21 = vector.load %arg8[%c0_15, %c0_16] : memref<1x128xf32, #tpu.memory_space<vmem>>, vector<1x128xf32>
    %22 = vector.broadcast %21 : vector<1x128xf32> to vector<8x128xf32>
    %23 = arith.mulf %20, %22 : vector<8x128xf32>
    %cst_17 = arith.constant dense<0.000000e+00> : vector<8xf32>
    %24 = vector.multi_reduction <add>, %23, %cst_17 [1] : vector<8x128xf32> to vector<8xf32>
    %25 = vector.shape_cast %24 : vector<8xf32> to vector<8x1xf32>
    %c0_18 = arith.constant 0 : index
    %c0_19 = arith.constant 0 : index
    %26 = vector.load %arg9[%c0_18, %c0_19] : memref<1x1xf32, #tpu.memory_space<vmem>>, vector<1x1xf32>
    %27 = vector.broadcast %26 : vector<1x1xf32> to vector<8x1xf32>
    %28 = arith.addf %25, %27 : vector<8x1xf32>
    %cst_20 = arith.constant -1.000000e+03 : f32
    %cst_21 = arith.constant 1.000000e+03 : f32
    %29 = vector.broadcast %cst_20 : f32 to vector<8x1xf32>
    %30 = arith.maximumf %29, %28 : vector<8x1xf32>
    %31 = vector.broadcast %cst_21 : f32 to vector<8x1xf32>
    %32 = arith.minimumf %31, %30 : vector<8x1xf32>
    %c0_22 = arith.constant 0 : index
    %c0_23 = arith.constant 0 : index
    %33 = vector.load %arg10[%c0_22, %c0_23] : memref<8x1xf32, #tpu.memory_space<vmem>>, vector<8x1xf32>
    tpu.vector_store %arg10[%c0_22, %c0_23], %32 {strides = array<i32>} : memref<8x1xf32, #tpu.memory_space<vmem>>, vector<8x1xf32>,
    return
  }
  func.func @transform_0(%arg0: i32) -> (i32, i32) {
    %c0_i32 = arith.constant 0 : i32
    %c0_i32_0 = arith.constant 0 : i32
    return %arg0, %c0_i32 : i32, i32
  }
  func.func @transform_1(%arg0: i32) -> (i32, i32) {
    %c0_i32 = arith.constant 0 : i32
    %c0_i32_0 = arith.constant 0 : i32
    %c0_i32_1 = arith.constant 0 : i32
    return %c0_i32, %c0_i32_0 : i32, i32
  }
  func.func @transform_2(%arg0: i32) -> (i32, i32) {
    %c0_i32 = arith.constant 0 : i32
    %c0_i32_0 = arith.constant 0 : i32
    %c0_i32_1 = arith.constant 0 : i32
    return %c0_i32, %c0_i32_0 : i32, i32
  }
  func.func @transform_3(%arg0: i32) -> (i32, i32) {
    %c0_i32 = arith.constant 0 : i32
    %c0_i32_0 = arith.constant 0 : i32
    %c0_i32_1 = arith.constant 0 : i32
    return %c0_i32, %c0_i32_0 : i32, i32
  }
  func.func @transform_4(%arg0: i32) -> (i32, i32) {
    %c0_i32 = arith.constant 0 : i32
    %c0_i32_0 = arith.constant 0 : i32
    %c0_i32_1 = arith.constant 0 : i32
    return %c0_i32, %c0_i32_0 : i32, i32
  }
  func.func @transform_5(%arg0: i32) -> (i32, i32) {
    %c0_i32 = arith.constant 0 : i32
    %c0_i32_0 = arith.constant 0 : i32
    %c0_i32_1 = arith.constant 0 : i32
    return %c0_i32, %c0_i32_0 : i32, i32
  }
  func.func @transform_6(%arg0: i32) -> (i32, i32) {
    %c0_i32 = arith.constant 0 : i32
    %c0_i32_0 = arith.constant 0 : i32
    %c0_i32_1 = arith.constant 0 : i32
    return %c0_i32, %c0_i32_0 : i32, i32
  }
  func.func @transform_7(%arg0: i32) -> (i32, i32) {
    %c0_i32 = arith.constant 0 : i32
    %c0_i32_0 = arith.constant 0 : i32
    %c0_i32_1 = arith.constant 0 : i32
    return %c0_i32, %c0_i32_0 : i32, i32
  }
  func.func @transform_8(%arg0: i32) -> (i32, i32) {
    %c0_i32 = arith.constant 0 : i32
    %c0_i32_0 = arith.constant 0 : i32
    %c0_i32_1 = arith.constant 0 : i32
    return %c0_i32, %c0_i32_0 : i32, i32
  }
  func.func @transform_9(%arg0: i32) -> (i32, i32) {
    %c0_i32 = arith.constant 0 : i32
    %c0_i32_0 = arith.constant 0 : i32
    return %arg0, %c0_i32 : i32, i32
  }
}

</mosaic_0001>

<bundles_post_ra>
// kernel: tpu_custom_call.1
= control target key start
LH: loop header
LB: loop body
LE: loop exit
PB: predicated region body
PF: predicated region fallthrough
CT: control target
= control target key end

     0   :  { %s1118_s0 = inlined_call_operand.hbm [shape: bf16[8,128], index: 0, kind: input, shape index: {}]   ;;  %s1119_s1 = inlined_call_operand.hbm [shape: bf16[128,256], index: 1, kind: input, shape index: {}]   ;;  %s1120_s2 = inlined_call_operand.vmem [shape: f32[1,256], index: 2, kind: input, shape index: {}]   ;;  %s1121_s3 = inlined_call_operand.hbm [shape: bf16[256,256], index: 3, kind: input, shape index: {}]   ;;  %s1122_s4 = inlined_call_operand.vmem [shape: f32[1,256], index: 4, kind: input, shape index: {}]   ;;  %s1123_s5 = inlined_call_operand.hbm [shape: bf16[256,128], index: 5, kind: input, shape index: {}]   ;;  %s1124_s6 = inlined_call_operand.vmem [shape: f32[1,128], index: 6, kind: input, shape index: {}]   ;;  %s1125_s7 = inlined_call_operand.vmem [shape: f32[1,128], index: 7, kind: input, shape index: {}]   ;;  %s1126_s8 = inlined_call_operand.<no memory space> [shape: f32[1,1], index: 8, kind: input, shape index: {}]   ;;  %s1127_s9 = inlined_call_operand.vmem [shape: f32[8,1], index: 9, kind: output, shape index: {}]  }
   0x1   :  { %v14_v0 = vstv %s1126_s8 }
   0x2   :  { %15 = vst [vmem:[#allocation2] sm:$0x1] %v14_v0 }
   0x3   :  { %16 = vsyncpa [#allocation4], 0 }
   0x4   :  { %17 = vsyncpa [#allocation6], 0 }
   0x5   :  { %18 = vsyncpa [#allocation9], 0  ;;  %s987_s11 = smov [#allocation5]   ;;  %s893_s15 = scalar_lea.hbm %s1119_s1, 2048 }
   0x6   :  { %s34_s12 = sshll.u32 %s987_s11, 4  ;;  %p894_p0 = scmp.ne.s32.totalorder %s1119_s1, %s893_s15  ;;  %s35_s12 = int_to_ptr.vmem [resolvable:$true] %s34_s12 }
   0x7   :  { %p897_p1 = scmp.lt.u32.totalorder %s893_s15, %s1119_s1 }
   0x9   :  { %p899_p2 = pnand %p897_p1, %p894_p0 }
   0xb   :  { %902 = shalt.err (!%p899_p2)
}
   0xc   :  { %s903_s8 = scalar_lea.vmem %s35_s12, 2048  ;;  %p908_p4 = scmp.lt.s32.totalorder %s35_s12, %s35_s12 }
   0xd   :  { %p904_p3 = scmp.ne.s32.totalorder %s35_s12, %s903_s8  ;;  %p909_p5 = scmp.lt.s32.totalorder %s903_s8, %s903_s8 }
   0xf   :  { %p910_p6 = por %p909_p5, %p908_p4 }
  0x11   :  { %p911_p7 = pnand %p910_p6, %p904_p3 }
  0x13   :  { %914 = shalt.err (!%p911_p7)
}
  0x14   :  { %s988_s20 = smov 128   ;;  %s989_s21 = smov 8  }
  0x15   :  { %40 = dma.hbm_to_vmem [thread:$0]  %s1119_s1, 2048, %s35_s12, [#allocation6], %s988_s20, %s988_s20, %s989_s21  }
  0x16   :  { %s990_s24 = smov [#allocation3]   ;;  %s991_s26 = smov [#allocation7]  }
  0x17   :  { %s25_s25 = sshll.u32 %s990_s24, 4  ;;  %s48_s27 = sshll.u32 %s991_s26, 4  ;;  %s26_s25 = int_to_ptr.vmem [resolvable:$true] %s25_s25  ;;  %s49_s27 = int_to_ptr.vmem [resolvable:$true] %s48_s27 }
  0x18   :  { %s915_s30 = scalar_lea.hbm %s1118_s0, 64 }
  0x19   :  { %p916_p8 = scmp.ne.s32.totalorder %s1118_s0, %s915_s30  ;;  %p919_p9 = scmp.lt.u32.totalorder %s915_s30, %s1118_s0 }
  0x1b   :  { %p921_p10 = pnand %p919_p9, %p916_p8 }
  0x1d   :  { %924 = shalt.err (!%p921_p10)
}
  0x1e   :  { %s925_s1 = scalar_lea.vmem %s26_s25, 64  ;;  %p930_p12 = scmp.lt.s32.totalorder %s26_s25, %s26_s25 }
  0x1f   :  { %p926_p11 = scmp.ne.s32.totalorder %s26_s25, %s925_s1  ;;  %p931_p13 = scmp.lt.s32.totalorder %s925_s1, %s925_s1 }
  0x21   :  { %p932_p0 = por %p931_p13, %p930_p12 }
  0x23   :  { %p933_p1 = pnand %p932_p0, %p926_p11 }
  0x25   :  { %936 = shalt.err (!%p933_p1)
}
  0x26   :  { %28 = dma.hbm_to_vmem [thread:$0]  %s1118_s0, 64, %s26_s25, [#allocation4]  }
  0x27   :  { %s937_s18 = scalar_lea.hbm %s1121_s3, 4096 }
  0x28   :  { %p938_p2 = scmp.ne.s32.totalorder %s1121_s3, %s937_s18  ;;  %p941_p3 = scmp.lt.u32.totalorder %s937_s18, %s1121_s3 }
  0x2a   :  { %p943_p4 = pnand %p941_p3, %p938_p2 }
  0x2c   :  { %946 = shalt.err (!%p943_p4)
}
  0x2d   :  { %s947_s24 = scalar_lea.vmem %s49_s27, 4096  ;;  %p952_p6 = scmp.lt.s32.totalorder %s49_s27, %s49_s27 }
  0x2e   :  { %p948_p5 = scmp.ne.s32.totalorder %s49_s27, %s947_s24  ;;  %p953_p7 = scmp.lt.s32.totalorder %s947_s24, %s947_s24 }
  0x30   :  { %p954_p8 = por %p953_p7, %p952_p6 }
  0x32   :  { %p955_p9 = pnand %p954_p8, %p948_p5 }
  0x34   :  { %958 = shalt.err (!%p955_p9)
}
  0x35   :  { %54 = dma.hbm_to_vmem [thread:$0]  %s1121_s3, 4096, %s49_s27, [#allocation6], %s988_s20, %s988_s20, %s989_s21  }
  0x36   :  { %s992_s26 = smov [#allocation8]   ;;  %s959_s10 = scalar_lea.hbm %s1123_s5, 2048 }
  0x37   :  { %s62_s28 = sshll.u32 %s992_s26, 4  ;;  %p960_p10 = scmp.ne.s32.totalorder %s1123_s5, %s959_s10  ;;  %s63_s28 = int_to_ptr.vmem [resolvable:$true] %s62_s28 }
  0x38   :  { %p963_p11 = scmp.lt.u32.totalorder %s959_s10, %s1123_s5 }
  0x3a   :  { %p965_p12 = pnand %p963_p11, %p960_p10 }
  0x3c   :  { %968 = shalt.err (!%p965_p12)
}
  0x3d   :  { %s969_s12 = scalar_lea.vmem %s63_s28, 2048  ;;  %p974_p0 = scmp.lt.s32.totalorder %s63_s28, %s63_s28 }
  0x3e   :  { %p970_p13 = scmp.ne.s32.totalorder %s63_s28, %s969_s12  ;;  %p975_p1 = scmp.lt.s32.totalorder %s969_s12, %s969_s12 }
  0x40   :  { %p976_p2 = por %p975_p1, %p974_p0 }
  0x42   :  { %p977_p3 = pnand %p976_p2, %p970_p13 }
  0x44   :  { %980 = shalt.err (!%p977_p3)
}
  0x45   :  { %s993_s3 = smov 64   ;;  %s994_s20 = smov 4  }
  0x46   :  { %68 = dma.hbm_to_vmem [thread:$0]  %s1123_s5, 2048, %s63_s28, [#allocation9], %s993_s3, %s993_s3, %s994_s20  }
  0x47   :  { %981 = dma.done.wait [#allocation4], 64  }
  0x48   :  { %982 = vsyncadd [#allocation4], 4294967232 }
  0x49   :  { %983 = dma.done.wait [#allocation6], 6144  }
  0x4a   :  { %984 = vsyncadd [#allocation6], 4294961152 }
  0x4b   :  { %985 = dma.done.wait [#allocation9], 2048  }
  0x4c   :  { %986 = vsyncadd [#allocation9], 4294965248  ;;  %v995_v1 = vmov 0   ;;  %v795_v2 = vld [vmem:[#allocation5 + $0x4] ss:$8 sps:$4 sm:$0xff]   ;;  %v871_v55 = vld [vmem:[#allocation8 + $0x50] sm:$0xff]   ;;  %v107_v59 = vlaneseq }
  0x4d   :  { %229 = vmatprep.mubr.bf16.mxu0 %v995_v1  ;;  %v797_v3 = vld [vmem:[#allocation5] ss:$8 sps:$4 sm:$0xff]   ;;  %197 = vmatprep.subr.bf16.mxu0 %v795_v2  ;;  %v798_v4 = vld [vmem:[#allocation5 + $0x14] ss:$8 sps:$4 sm:$0xff]   ;;  %v800_v5 = vld [vmem:[#allocation5 + $0x10] ss:$8 sps:$4 sm:$0xff]  }
  0x4e   :  { %198 = vmatpush1.bf16.msra.mxu0 %v797_v3  ;;  %v801_v6 = vld [vmem:[#allocation5 + $0x24] ss:$8 sps:$4 sm:$0xff]   ;;  %v803_v7 = vld [vmem:[#allocation5 + $0x20] ss:$8 sps:$4 sm:$0xff]   ;;  %v804_v8 = vld [vmem:[#allocation5 + $0x34] ss:$8 sps:$4 sm:$0xff]  }
  0x4f   :  { %199 = vmatprep.subr.bf16.mxu0 %v798_v4  ;;  %v806_v9 = vld [vmem:[#allocation5 + $0x30] ss:$8 sps:$4 sm:$0xff]   ;;  %v807_v10 = vld [vmem:[#allocation5 + $0x44] ss:$8 sps:$4 sm:$0xff]   ;;  %v821_v12 = vld [vmem:[#allocation7] ss:$8 sps:$4 sm:$0xff]  }
  0x50   :  { %v819_v11 = vld [vmem:[#allocation7 + $0x4] ss:$8 sps:$4 sm:$0xff]   ;;  %v822_v13 = vld [vmem:[#allocation7 + $0x14] ss:$8 sps:$4 sm:$0xff]   ;;  %v809_v14 = vld [vmem:[#allocation5 + $0x40] ss:$8 sps:$4 sm:$0xff]  }
  0x51   :  { %446 = vmatprep.subr.bf16.mxu1 %v819_v11  ;;  %v824_v15 = vld [vmem:[#allocation7 + $0x10] ss:$8 sps:$4 sm:$0xff]   ;;  %v825_v16 = vld [vmem:[#allocation7 + $0x24] ss:$8 sps:$4 sm:$0xff]   ;;  %v810_v17 = vld [vmem:[#allocation5 + $0x54] ss:$8 sps:$4 sm:$0xff]  }
  0x52   :  { %200 = vmatpush1.bf16.msra.mxu0 %v800_v5  ;;  %447 = vmatpush1.bf16.msra.mxu1 %v821_v12  ;;  %v812_v18 = vld [vmem:[#allocation5 + $0x50] ss:$8 sps:$4 sm:$0xff]   ;;  %v827_v19 = vld [vmem:[#allocation7 + $0x20] ss:$8 sps:$4 sm:$0xff]   ;;  %v828_v20 = vld [vmem:[#allocation7 + $0x34] ss:$8 sps:$4 sm:$0xff]  }
  0x53   :  { %201 = vmatprep.subr.bf16.mxu0 %v801_v6  ;;  %448 = vmatprep.subr.bf16.mxu1 %v822_v13  ;;  %v813_v21 = vld [vmem:[#allocation5 + $0x64] ss:$8 sps:$4 sm:$0xff]   ;;  %v815_v22 = vld [vmem:[#allocation5 + $0x60] ss:$8 sps:$4 sm:$0xff]   ;;  %v830_v23 = vld [vmem:[#allocation7 + $0x30] ss:$8 sps:$4 sm:$0xff]  }
  0x54   :  { %v831_v24 = vld [vmem:[#allocation7 + $0x44] ss:$8 sps:$4 sm:$0xff]   ;;  %v816_v25 = vld [vmem:[#allocation5 + $0x74] ss:$8 sps:$4 sm:$0xff]   ;;  %v818_v26 = vld [vmem:[#allocation5 + $0x70] ss:$8 sps:$4 sm:$0xff]  }
  0x55   :  { %v833_v27 = vld [vmem:[#allocation7 + $0x40] ss:$8 sps:$4 sm:$0xff]   ;;  %v834_v28 = vld [vmem:[#allocation7 + $0x54] ss:$8 sps:$4 sm:$0xff]   ;;  %v836_v29 = vld [vmem:[#allocation7 + $0x50] ss:$8 sps:$4 sm:$0xff]  }
  0x56   :  { %202 = vmatpush1.bf16.msra.mxu0 %v803_v7  ;;  %449 = vmatpush1.bf16.msra.mxu1 %v824_v15  ;;  %v88_v30 = vld [vmem:[#allocation3] sm:$0xf]  ;;  %v837_v31 = vld [vmem:[#allocation7 + $0x64] ss:$8 sps:$4 sm:$0xff]   ;;  %v839_v32 = vld [vmem:[#allocation7 + $0x60] ss:$8 sps:$4 sm:$0xff]  }
  0x57   :  { %203 = vmatprep.subr.bf16.mxu0 %v804_v8  ;;  %450 = vmatprep.subr.bf16.mxu1 %v825_v16  ;;  %v840_v33 = vld [vmem:[#allocation7 + $0x74] ss:$8 sps:$4 sm:$0xff]   ;;  %v842_v34 = vld [vmem:[#allocation7 + $0x70] ss:$8 sps:$4 sm:$0xff]   ;;  %v843_v35 = vld [vmem:[#allocation7 + $0x84] ss:$8 sps:$4 sm:$0xff]  }
  0x58   :  { %v845_v36 = vld [vmem:[#allocation7 + $0x80] ss:$8 sps:$4 sm:$0xff]   ;;  %v846_v37 = vld [vmem:[#allocation7 + $0x94] ss:$8 sps:$4 sm:$0xff]   ;;  %v848_v38 = vld [vmem:[#allocation7 + $0x90] ss:$8 sps:$4 sm:$0xff]  }
  0x59   :  { %v849_v39 = vld [vmem:[#allocation7 + $0xa4] ss:$8 sps:$4 sm:$0xff]   ;;  %v851_v40 = vld [vmem:[#allocation7 + $0xa0] ss:$8 sps:$4 sm:$0xff]   ;;  %v852_v41 = vld [vmem:[#allocation7 + $0xb4] ss:$8 sps:$4 sm:$0xff]  }
  0x5a   :  { %204 = vmatpush1.bf16.msra.mxu0 %v806_v9  ;;  %451 = vmatpush1.bf16.msra.mxu1 %v827_v19  ;;  %v854_v42 = vld [vmem:[#allocation7 + $0xb0] ss:$8 sps:$4 sm:$0xff]   ;;  %v855_v43 = vld [vmem:[#allocation7 + $0xc4] ss:$8 sps:$4 sm:$0xff]   ;;  %v857_v44 = vld [vmem:[#allocation7 + $0xc0] ss:$8 sps:$4 sm:$0xff]  }
  0x5b   :  { %205 = vmatprep.subr.bf16.mxu0 %v807_v10  ;;  %452 = vmatprep.subr.bf16.mxu1 %v828_v20  ;;  %v858_v45 = vld [vmem:[#allocation7 + $0xd4] ss:$8 sps:$4 sm:$0xff]   ;;  %v860_v46 = vld [vmem:[#allocation7 + $0xd0] ss:$8 sps:$4 sm:$0xff]   ;;  %v861_v47 = vld [vmem:[#allocation7 + $0xe4] ss:$8 sps:$4 sm:$0xff]  }
  0x5c   :  { %v863_v48 = vld [vmem:[#allocation7 + $0xe0] ss:$8 sps:$4 sm:$0xff]   ;;  %v864_v49 = vld [vmem:[#allocation7 + $0xf4] ss:$8 sps:$4 sm:$0xff]   ;;  %v866_v50 = vld [vmem:[#allocation7 + $0xf0] ss:$8 sps:$4 sm:$0xff]  }
  0x5d   :  { %v867_v51 = vld [vmem:[#allocation8 + $0x40] sm:$0xff]   ;;  %v869_v53 = vld [vmem:[#allocation8 + $0x48] sm:$0xff]   ;;  %v872_v56 = vld [vmem:[#allocation8 + $0x10] sm:$0xff]   ;;  %v108_v60 = vshrl.u32 %v107_v59, 7  ;;  %vm687_vm0 = vcmask 7168  }
  0x5e   :  { %206 = vmatpush1.bf16.msra.mxu0 %v809_v14  ;;  %453 = vmatpush1.bf16.msra.mxu1 %v830_v23  ;;  %v868_v52 = vld [vmem:[#allocation8] sm:$0xff]   ;;  %v870_v54 = vld [vmem:[#allocation8 + $0x8] sm:$0xff]   ;;  %v873_v57 = vld [vmem:[#allocation8 + $0x58] sm:$0xff]  }
  0x5f   :  { %207 = vmatprep.subr.bf16.mxu0 %v810_v17  ;;  %454 = vmatprep.subr.bf16.mxu1 %v831_v24  ;;  %v874_v58 = vld [vmem:[#allocation8 + $0x18] sm:$0xff]   ;;  %v109_v61 = vsub.s32 0, %v108_v60  ;;  %v113_v63 = vsub.s32 1, %v108_v60  ;;  %v875_v12 = vld [vmem:[#allocation8 + $0x60] sm:$0xff]   ;;  %v877_v14 = vld [vmem:[#allocation8 + $0x68] sm:$0xff]  }
  0x60   :  { %v105_v62 = vld [vmem:[%s1120_s2] sm:$0x3]  ;;  %v876_v13 = vld [vmem:[#allocation8 + $0x20] sm:$0xff]   ;;  %v878_v15 = vld [vmem:[#allocation8 + $0x28] sm:$0xff]  }
  0x61   :  { %v110_v0 = vrot.slane %v105_v62, %v109_v61  ;;  %v114_v1 = vrot.slane %v105_v62, %v113_v63  ;;  %v879_v16 = vld [vmem:[#allocation8 + $0x70] sm:$0xff]   ;;  %v882_v19 = vld [vmem:[#allocation8 + $0x38] sm:$0xff]  }
  0x62   :  { %208 = vmatpush1.bf16.msra.mxu0 %v812_v18  ;;  %455 = vmatpush1.bf16.msra.mxu1 %v833_v27  ;;  %v880_v17 = vld [vmem:[#allocation8 + $0x30] sm:$0xff]   ;;  %v881_v18 = vld [vmem:[#allocation8 + $0x78] sm:$0xff]  }
  0x63   :  { %209 = vmatprep.subr.bf16.mxu0 %v813_v21  ;;  %456 = vmatprep.subr.bf16.mxu1 %v834_v28  ;;  %v274_v20 = vld [vmem:[%s1122_s4] sm:$0x3] }
  0x64   :  { %v279_v21 = vrot.slane %v274_v20, %v109_v61 }
  0x66   :  { %210 = vmatpush1.bf16.msra.mxu0 %v815_v22  ;;  %457 = vmatpush1.bf16.msra.mxu1 %v836_v29  ;;  %v283_v22 = vrot.slane %v274_v20, %v113_v63 }
  0x67   :  { %211 = vmatprep.subr.bf16.mxu0 %v816_v25  ;;  %458 = vmatprep.subr.bf16.mxu1 %v837_v31 }
  0x6a   :  { %212 = vmatpush1.bf16.msra.mxu0 %v818_v26  ;;  %459 = vmatpush1.bf16.msra.mxu1 %v839_v32 }
  0x6b   :  { %460 = vmatprep.subr.bf16.mxu1 %v840_v33  ;;  %764 = vmatprep.subr.bf16.mxu0 %v867_v51 }
  0x6d   :  { %230 = vmatmul.mubr.bf16.vlgmr.msra.gmra.mrb[0].mxu0 %v88_v30 }
  0x6e   :  { %461 = vmatpush1.bf16.msra.mxu1 %v842_v34  ;;  %765 = vmatpush3.bf16.msra.mxu0 %v868_v52  ;;  %v744_v34 = vld [vmem:[%s1124_s6] ss:$0 sm:$0xff] }
  0x6f   :  { %462 = vmatprep.subr.bf16.mxu1 %v843_v35  ;;  %766 = vmatprep.subr.bf16.mxu0 %v869_v53 }
  0x72   :  { %463 = vmatpush1.bf16.msra.mxu1 %v845_v36  ;;  %767 = vmatpush3.bf16.msra.mxu0 %v870_v54 }
  0x73   :  { %464 = vmatprep.subr.bf16.mxu1 %v846_v37  ;;  %768 = vmatprep.subr.bf16.mxu0 %v871_v55 }
  0x76   :  { %465 = vmatpush1.bf16.msra.mxu1 %v848_v38  ;;  %769 = vmatpush3.bf16.msra.mxu0 %v872_v56 }
  0x77   :  { %466 = vmatprep.subr.bf16.mxu1 %v849_v39  ;;  %770 = vmatprep.subr.bf16.mxu0 %v873_v57 }
  0x7a   :  { %467 = vmatpush1.bf16.msra.mxu1 %v851_v40  ;;  %771 = vmatpush3.bf16.msra.mxu0 %v874_v58  ;;  %v761_v40 = vld [vmem:[%s1125_s7] ss:$0 sm:$0xff] }
  0x7b   :  { %468 = vmatprep.subr.bf16.mxu1 %v852_v41  ;;  %772 = vmatprep.subr.bf16.mxu0 %v875_v12 }
  0x7e   :  { %469 = vmatpush1.bf16.msra.mxu1 %v854_v42  ;;  %773 = vmatpush3.bf16.msra.mxu0 %v876_v13 }
  0x7f   :  { %470 = vmatprep.subr.bf16.mxu1 %v855_v43  ;;  %774 = vmatprep.subr.bf16.mxu0 %v877_v14  ;;  %v762_v43 = vld [vmem:[#allocation2] ss:$0 sm:$0xff] }
  0x82   :  { %471 = vmatpush1.bf16.msra.mxu1 %v857_v44  ;;  %775 = vmatpush3.bf16.msra.mxu0 %v878_v15 }
  0x83   :  { %472 = vmatprep.subr.bf16.mxu1 %v858_v45  ;;  %776 = vmatprep.subr.bf16.mxu0 %v879_v16 }
  0x86   :  { %473 = vmatpush1.bf16.msra.mxu1 %v860_v46  ;;  %777 = vmatpush3.bf16.msra.mxu0 %v880_v17 }
  0x87   :  { %474 = vmatprep.subr.bf16.mxu1 %v861_v47  ;;  %778 = vmatprep.subr.bf16.mxu0 %v881_v18 }
  0x8a   :  { %475 = vmatpush1.bf16.msra.mxu1 %v863_v48  ;;  %779 = vmatpush3.bf16.msra.mxu0 %v882_v19 }
  0x8b   :  { %476 = vmatprep.subr.bf16.mxu1 %v864_v49 }
  0x8e   :  { %477 = vmatpush1.bf16.msra.mxu1 %v866_v50 }
 0x140   :  { %v231_v2 = vpop.f32.mrb[0].mxu0 }
 0x141   :  { %v232_v3 = vadd.f32 %v231_v2, %v110_v0  ;;  %v233_v4 = vpop.f32.mrb[1].mxu0 }
 0x142   :  { %v234_v5 = vadd.f32 %v233_v4, %v114_v1  ;;  %v235_v6 = vpop.f32.mrb[2].mxu0 }
 0x143   :  { %883 = vtanh.f32 %v232_v3  ;;  %v236_v7 = vpop.f32.mrb[3].mxu0 }
 0x144   :  { %885 = vtanh.f32 %v234_v5 }
 0x14d   :  { %v884_v8 = vpop.eup %883 }
 0x14e   :  { %v886_v9 = vpop.eup %885  ;;  %v240_v11 = vpack.c.bf16 %v884_v8, %v884_v8 }
 0x14f   :  { %v241_v10 = vpack.c.bf16 %v886_v9, %v886_v9 }
 0x151   :  { %478 = vmatprep.mubr.bf16.mxu1 %v241_v10 }
 0x152   :  { %479 = vmatmul.mubr.bf16.vlgmr.msra.gmra.mrb[0].mxu1 %v240_v11 }
 0x225   :  { %v480_v23 = vpop.f32.mrb[0].mxu1 }
 0x226   :  { %v481_v24 = vadd.f32 %v480_v23, %v279_v21  ;;  %v482_v25 = vpop.f32.mrb[1].mxu1 }
 0x227   :  { %v483_v26 = vadd.f32 %v482_v25, %v283_v22  ;;  %v484_v27 = vpop.f32.mrb[2].mxu1 }
 0x228   :  { %887 = vtanh.f32 %v481_v24  ;;  %v485_v28 = vpop.f32.mrb[3].mxu1 }
 0x229   :  { %889 = vtanh.f32 %v483_v26 }
 0x232   :  { %v888_v29 = vpop.eup %887 }
 0x233   :  { %v890_v30 = vpop.eup %889  ;;  %v489_v32 = vpack.c.bf16 %v888_v29, %v888_v29 }
 0x234   :  { %v490_v31 = vpack.c.bf16 %v890_v30, %v890_v30 }
 0x236   :  { %658 = vmatprep.mubr.bf16.mxu0 %v490_v31 }
 0x237   :  { %659 = vmatmul.mubr.bf16.vlgmr.msra.gmra.mrb[4].mxu0 %v489_v32 }
 0x30a   :  { %v780_v33 = vpop.f32.mrb[4].mxu0 }
 0x30b   :  { %v781_v35 = vpop.f32.mrb[5].mxu0 }
 0x30c   :  { %v782_v36 = vadd.f32 %v781_v35, %v780_v33  ;;  %v783_v37 = vpop.f32.mrb[6].mxu0 }
 0x30d   :  { %v784_v38 = vpop.f32.mrb[7].mxu0 }
 0x30e   :  { %v661_v39 = vadd.f32 %v782_v36, %v744_v34 }
 0x310   :  { %891 = vtanh.f32 %v661_v39 }
 0x31a   :  { %v892_v41 = vpop.eup %891 }
 0x31b   :  { %v674_v42 = vmul.f32 %v892_v41, %v761_v40 }
 0x31d   :  { %675 = vadd.xlane.f32.xlu0 %v674_v42 }
 0x3aa   :  { %v676_v44 = vpop.xlane.xlu0 %675 }
 0x3ab   :  { %v684_v45 = vadd.f32 %v762_v43, %v676_v44 }
 0x3ad   :  { %v763_v46 = vclamps-f32 %v684_v45, 1000.0 }
 0x3af   :  { %688 = vst.msk [vmem:[%s1127_s9] sm:$0xff] %vm687_vm0, %v763_v46 }
 0x3b0   :  { %693 = vsyncpa [#allocation4], 1 }
 0x3b1   :  { %694 = vsyncpa [#allocation6], 1 }
 0x3b2   :  { %695 = vsyncpa [#allocation9], 1 }

</bundles_post_ra>
